<compile_context>
chip_gen: v7x
topology: tpu7x:2x2x1
jax: 0.10.0
libtpu: 0.0.40
codegen_flags: <defaults>
</compile_context>

<pallas_src>
import functools
import math

import jax
import jax.numpy as jnp
from jax.experimental import pallas as pl
from jax.experimental.pallas import tpu as pltpu

LANES = 128                       # vreg lane width; last dim of the slab
MAX_BLOCK_ROWS = 4096             # 4096 x 128 f32 = 2 MiB / block (2-4 MiB sweet spot)
VMEM_LIMIT_BYTES = 48 * 1024 * 1024


def _round_up(n, m):
    return -(-n // m) * m


def _compute_dtype():
    """bf16 transcendentals only pay off (bf16 EUP/VPU) on v6e / v7x."""
    try:
        kind = jax.devices()[0].device_kind.lower()
    except Exception:
        return jnp.float32
    if ("v6" in kind) or ("v7" in kind) or ("tpu7" in kind):
        return jnp.bfloat16
    return jnp.float32


def _gaussian_noise_prng_kernel(sigma, compute_dtype, seed_ref, x_ref, o_ref):
    """TPU path: on-chip PRNG + half-tile Box-Muller (cos branch + sign*sqrt(1-c^2))."""
    # Distinct, independent stream per grid step -> "parallel" grid axis is safe.
    pltpu.prng_seed(seed_ref[0], pl.program_id(0))

    rows, lanes = x_ref.shape
    half = rows // 2

    # One 32-bit draw per PAIR of outputs: each (half, lanes) draw feeds both
    # Box-Muller branches (top half of the tile and bottom half of the tile).
    b1 = pltpu.bitcast(pltpu.prng_random_bits((half, lanes)), jnp.uint32)
    b2 = pltpu.bitcast(pltpu.prng_random_bits((half, lanes)), jnp.uint32)

    one_exp = jnp.uint32(0x3F800000)
    # 23 random mantissa bits -> f32 in [1, 2); no int->float converts.
    # "2 - v1" is exact in f32 and gives a uniform in (0, 1]  (log-safe).
    u1 = 2.0 - pltpu.bitcast((b1 >> 9) | one_exp, jnp.float32)        # (0, 1]
    v2 = pltpu.bitcast((b2 >> 9) | one_exp, jnp.float32)              # [1, 2)

    # Radius: log (EUP) + sqrt run in compute_dtype (bf16 on v6e/v7x halves the
    # EUP cost; f32 on v5e).  u1 >= 2^-23 so the bf16 cast never underflows.
    r = jnp.sqrt(-2.0 * jnp.log(u1.astype(compute_dtype))).astype(jnp.float32)

    # Angle: theta in [2*pi, 4*pi) -- cos is periodic, so no "-1" needed on v2.
    theta = (2.0 * math.pi) * v2
    c = jnp.cos(theta)                                                # f32 trig only

    # Second normal via an independent random sign * sqrt(1 - cos^2): same joint
    # law as r*sin(theta), but the whole sin() polynomial chain disappears.
    sgn = pltpu.bitcast((b2 << 31) | one_exp, jnp.float32)            # +/- 1.0 from bit 0
    s = sgn * jnp.sqrt(jnp.maximum(1.0 - c * c, 0.0))

    z_cos = r * c
    z_sin = r * s

    x_top = x_ref[:half, :].astype(jnp.float32)
    x_bot = x_ref[half:, :].astype(jnp.float32)
    o_ref[:half, :] = (x_top + (sigma * x_top) * z_cos).astype(o_ref.dtype)
    o_ref[half:, :] = (x_bot + (sigma * x_bot) * z_sin).astype(o_ref.dtype)


def _gaussian_noise_apply_kernel(sigma, x_ref, z_ref, o_ref):
    """Portable path: apply pre-generated standard-normal noise elementwise."""
    xf = x_ref[...].astype(jnp.float32)
    o_ref[...] = (xf + (sigma * xf) * z_ref[...]).astype(o_ref.dtype)


def _apply_noise_jnp(x_part, key, sigma):
    """Plain-jnp fallback for tiny inputs / sub-128-element tails."""
    z = jax.random.normal(key, x_part.shape, dtype=jnp.float32)
    xf = x_part.astype(jnp.float32)
    return (xf + (sigma * xf) * z).astype(x_part.dtype)


def gaussian_noise(x, seed, *, sigma=0.02, training=True, is_relative_detach=False):
    """JAX wrapper mirroring GaussianNoise.forward (x: NCHW float array)."""
    # TODO(synk): is_relative_detach only changes autograd (detach of the scale),
    # never the forward values, so there is nothing to translate for forward.
    del is_relative_detach
    if (not training) or sigma == 0.0:
        return x

    sigma = float(sigma)
    orig_shape = x.shape
    total = x.size
    if total == 0:
        return x

    # Sub-32-bit dtypes pack 2 rows/sublane -> keep the Box-Muller half-split on
    # a packed-sublane boundary.
    row_align = 32 if x.dtype.itemsize < 4 else 16

    x_flat = x.reshape(-1)
    main_rows = total // LANES            # 128-lane aligned prefix
    main_elems = main_rows * LANES
    tail = total - main_elems             # < 128 elements

    key = jax.random.PRNGKey(int(seed))

    if main_rows < row_align:
        # Tiny input: a kernel launch is pure overhead; one fused XLA op.
        return _apply_noise_jnp(x_flat, key, sigma).reshape(orig_shape)

    x2d = x_flat[:main_elems].reshape(main_rows, LANES)   # no-op slice when tail == 0

    block_rows = min(MAX_BLOCK_ROWS, (main_rows // row_align) * row_align)
    if pl.cdiv(main_rows, block_rows) < 2 and block_rows >= 2 * row_align:
        # Guarantee >= 2 grid steps so the "parallel" axis can shard across
        # v7x's two TensorCores (negligible cost on single-TC v5e/v6e).
        block_rows = _round_up(-(-main_rows // 2), row_align)
    grid = (pl.cdiv(main_rows, block_rows),)              # last block may be partial

    block = pl.BlockSpec((block_rows, LANES), lambda i: (i, 0))
    params = pltpu.CompilerParams(
        dimension_semantics=("parallel",),
        vmem_limit_bytes=VMEM_LIMIT_BYTES,
    )
    out_shape = jax.ShapeDtypeStruct((main_rows, LANES), x.dtype)

    if jax.default_backend() == "tpu":
        seed_arr = jnp.asarray([seed], dtype=jnp.int32)
        main_out = pl.pallas_call(
            functools.partial(_gaussian_noise_prng_kernel, sigma, _compute_dtype()),
            out_shape=out_shape,
            grid=grid,
            in_specs=[
                pl.BlockSpec(memory_space=pltpu.MemorySpace.SMEM),  # seed scalar
                block,                                              # x tile
            ],
            out_specs=block,
            compiler_params=params,
        )(seed_arr, x2d)
    else:
        # TODO(synk): pltpu.prng_seed / prng_random_bits have no lowering
        # off-TPU; on other backends draw the normals with jax.random and keep
        # only the fused elementwise apply in Pallas.
        z2d = jax.random.normal(key, (main_rows, LANES), dtype=jnp.float32)
        main_out = pl.pallas_call(
            functools.partial(_gaussian_noise_apply_kernel, sigma),
            out_shape=out_shape,
            grid=grid,
            in_specs=[block, block],
            out_specs=block,
            compiler_params=params,
        )(x2d, z2d)

    main_out_flat = main_out.reshape(-1)
    if tail == 0:
        return main_out_flat.reshape(orig_shape)          # free reshape, no copies

    # Sub-128-element leftover: handled in plain jnp instead of padding and
    # re-slicing the whole tensor (which re-streamed the full array twice).
    tail_out = _apply_noise_jnp(x_flat[main_elems:],
                                jax.random.fold_in(key, 0x7A11), sigma)
    return jnp.concatenate([main_out_flat, tail_out]).reshape(orig_shape)


if __name__ == "__main__":
    key = jax.random.PRNGKey(0)

    # 1) Small NCHW input consistent with an ESRGAN feature map (2*4*16*16 = 16*128).
    x = jax.random.normal(key, (2, 4, 16, 16), dtype=jnp.float32)
    y = jax.block_until_ready(gaussian_noise(x, seed=1234, sigma=0.02, training=True))
    assert y.shape == x.shape and y.dtype == x.dtype
    assert bool(jnp.all(jnp.isfinite(y)))
    # Noise is multiplicative: (y - x) / (sigma * x) should be ~ N(0, 1).
    z = (y - x) / (0.02 * x)
    assert abs(float(jnp.mean(z))) < 0.2
    assert 0.7 < float(jnp.std(z)) < 1.3

    # Eval mode (or sigma == 0) is the identity, exactly as in PyTorch.
    y_eval = gaussian_noise(x, seed=1234, sigma=0.02, training=False)
    assert bool(jnp.array_equal(y_eval, x))

    # 2) Larger map -> multi-step grid (exercises the "parallel" / 2-TC split path).
    x2 = jax.random.normal(jax.random.fold_in(key, 1), (2, 8, 32, 32), dtype=jnp.float32)
    y2 = jax.block_until_ready(gaussian_noise(x2, seed=7, sigma=0.1, training=True))
    assert y2.shape == x2.shape and bool(jnp.all(jnp.isfinite(y2)))
    z2 = (y2 - x2) / (0.1 * x2)
    assert abs(float(jnp.mean(z2))) < 0.2 and 0.7 < float(jnp.std(z2)) < 1.3

    # 3) Element count not a multiple of 128 -> aligned prefix through the
    #    kernel (partial last block), tiny tail via jnp; no pad/slice round trip.
    x3 = jax.random.normal(jax.random.fold_in(key, 2), (1, 3, 33, 35), dtype=jnp.float32)
    y3 = jax.block_until_ready(gaussian_noise(x3, seed=99, sigma=0.02, training=True))
    assert y3.shape == x3.shape and bool(jnp.all(jnp.isfinite(y3)))

    print("KERNEL_OK")
</pallas_src>

<mosaic_0001>
module attributes {stable_mosaic.version = 11 : i64} {
  func.func @_gaussian_noise_apply_kernel(%arg0: i32, %arg1: memref<16x128xf32, #tpu.memory_space<vmem>>, %arg2: memref<16x128xf32, #tpu.memory_space<vmem>>, %arg3: memref<16x128xf32, #tpu.memory_space<vmem>>) attributes {dimension_semantics = [#tpu.dimension_semantics<parallel>], iteration_bounds = array<i64: 1>, scalar_prefetch = 0 : i64, scratch_operands = 0 : i64, tpu.core_type = #tpu.core_type<tc>, window_params = [{transform_indices = @transform_0, window_bounds = array<i64: 16, 128>}, {transform_indices = @transform_1, window_bounds = array<i64: 16, 128>}, {transform_indices = @transform_2, window_bounds = array<i64: 16, 128>}]} {
    %c0 = arith.constant 0 : index
    %c0_0 = arith.constant 0 : index
    %0 = vector.load %arg1[%c0, %c0_0] : memref<16x128xf32, #tpu.memory_space<vmem>>, vector<16x128xf32>
    %cst = arith.constant 2.000000e-02 : f32
    %1 = vector.broadcast %cst : f32 to vector<16x128xf32>
    %2 = arith.mulf %1, %0 : vector<16x128xf32>
    %c0_1 = arith.constant 0 : index
    %c0_2 = arith.constant 0 : index
    %3 = vector.load %arg2[%c0_1, %c0_2] : memref<16x128xf32, #tpu.memory_space<vmem>>, vector<16x128xf32>
    %4 = arith.mulf %2, %3 : vector<16x128xf32>
    %5 = arith.addf %0, %4 : vector<16x128xf32>
    %c0_3 = arith.constant 0 : index
    %c0_4 = arith.constant 0 : index
    %6 = vector.load %arg3[%c0_3, %c0_4] : memref<16x128xf32, #tpu.memory_space<vmem>>, vector<16x128xf32>
    tpu.vector_store %arg3[%c0_3, %c0_4], %5 {strides = array<i32>} : memref<16x128xf32, #tpu.memory_space<vmem>>, vector<16x128xf32>,
    return
  }
  func.func @transform_0(%arg0: i32) -> (i32, i32) {
    %c0_i32 = arith.constant 0 : i32
    %c0_i32_0 = arith.constant 0 : i32
    return %arg0, %c0_i32 : i32, i32
  }
  func.func @transform_1(%arg0: i32) -> (i32, i32) {
    %c0_i32 = arith.constant 0 : i32
    %c0_i32_0 = arith.constant 0 : i32
    return %arg0, %c0_i32 : i32, i32
  }
  func.func @transform_2(%arg0: i32) -> (i32, i32) {
    %c0_i32 = arith.constant 0 : i32
    %c0_i32_0 = arith.constant 0 : i32
    return %arg0, %c0_i32 : i32, i32
  }
}

</mosaic_0001>

<bundles_post_ra>
// kernel: tpu_custom_call.1
= control target key start
LH: loop header
LB: loop body
LE: loop exit
PB: predicated region body
PF: predicated region fallthrough
CT: control target
= control target key end

     0   :  { %7 = vsyncpa [#allocation3], 0  ;;  %s212_s0 = inlined_call_operand.hbm [shape: f32[16,128], index: 0, kind: input, shape index: {}]   ;;  %s213_s1 = inlined_call_operand.hbm [shape: f32[16,128], index: 1, kind: input, shape index: {}]   ;;  %s214_s2 = inlined_call_operand.hbm [shape: f32[16,128], index: 2, kind: output, shape index: {}]  }
   0x1   :  { %8 = vsyncpa [#allocation6], 0 }
   0x2   :  { %9 = vsyncpa [#allocation4], 0  ;;  %s147_s9 = smov [#allocation2]   ;;  %s75_s13 = scalar_lea.hbm %s212_s0, 256 }
   0x3   :  { %s15_s10 = sshll.u32 %s147_s9, 4  ;;  %p76_p0 = scmp.ne.s32.totalorder %s212_s0, %s75_s13  ;;  %s16_s10 = int_to_ptr.vmem [resolvable:$true] %s15_s10 }
   0x4   :  { %p79_p1 = scmp.lt.u32.totalorder %s75_s13, %s212_s0 }
   0x6   :  { %p81_p2 = pnand %p79_p1, %p76_p0 }
   0x8   :  { %84 = shalt.err (!%p81_p2)
}
   0x9   :  { %s85_s18 = scalar_lea.vmem %s16_s10, 256  ;;  %p90_p4 = scmp.lt.s32.totalorder %s16_s10, %s16_s10 }
   0xa   :  { %p86_p3 = scmp.ne.s32.totalorder %s16_s10, %s85_s18  ;;  %p91_p5 = scmp.lt.s32.totalorder %s85_s18, %s85_s18 }
   0xc   :  { %p92_p6 = por %p91_p5, %p90_p4 }
   0xe   :  { %p93_p7 = pnand %p92_p6, %p86_p3 }
  0x10   :  { %96 = shalt.err (!%p93_p7)
}
  0x11   :  { %s148_s19 = smov 128   ;;  %s149_s20 = smov 8  }
  0x12   :  { %21 = dma.hbm_to_vmem [thread:$0]  %s212_s0, 256, %s16_s10, [#allocation3], %s148_s19, %s148_s19, %s149_s20  }
  0x13   :  { %s150_s23 = smov [#allocation5]   ;;  %s97_s27 = scalar_lea.hbm %s213_s1, 256 }
  0x14   :  { %s27_s24 = sshll.u32 %s150_s23, 4  ;;  %p98_p8 = scmp.ne.s32.totalorder %s213_s1, %s97_s27  ;;  %s28_s24 = int_to_ptr.vmem [resolvable:$true] %s27_s24 }
  0x15   :  { %p101_p9 = scmp.lt.u32.totalorder %s97_s27, %s213_s1 }
  0x17   :  { %p103_p10 = pnand %p101_p9, %p98_p8 }
  0x19   :  { %106 = shalt.err (!%p103_p10)
}
  0x1a   :  { %s107_s4 = scalar_lea.vmem %s28_s24, 256  ;;  %p112_p12 = scmp.lt.s32.totalorder %s28_s24, %s28_s24 }
  0x1b   :  { %p108_p11 = scmp.ne.s32.totalorder %s28_s24, %s107_s4  ;;  %p113_p13 = scmp.lt.s32.totalorder %s107_s4, %s107_s4 }
  0x1d   :  { %p114_p0 = por %p113_p13, %p112_p12 }
  0x1f   :  { %p115_p1 = pnand %p114_p0, %p108_p11 }
  0x21   :  { %118 = shalt.err (!%p115_p1)
}
  0x22   :  { %33 = dma.hbm_to_vmem [thread:$0]  %s213_s1, 256, %s28_s24, [#allocation6], %s148_s19, %s148_s19, %s149_s20  }
  0x23   :  { %141 = dma.done.wait [#allocation3], 256  }
  0x24   :  { %142 = vsyncadd [#allocation3], 4294967040 }
  0x25   :  { %143 = dma.done.wait [#allocation6], 256  }
  0x26   :  { %144 = vsyncadd [#allocation6], 4294967040  ;;  %v40_v0 = vld [vmem:[#allocation2] sm:$0xff]  ;;  %v44_v1 = vld [vmem:[#allocation5] sm:$0xff]  ;;  %s151_s6 = smov [#allocation7]  }
  0x27   :  { %v41_v2 = vld [vmem:[#allocation2 + $0x8] sm:$0xff]  ;;  %v42_v3 = vmul.f32 0.02, %v40_v0  ;;  %v45_v5 = vld [vmem:[#allocation5 + $0x8] sm:$0xff]  ;;  %s57_s7 = sshll.u32 %s151_s6, 4  ;;  %s58_s7 = int_to_ptr.vmem [resolvable:$true] %s57_s7 }
  0x28   :  { %v43_v4 = vmul.f32 0.02, %v41_v2  ;;  %s119_s1 = scalar_lea.vmem %s58_s7, 256  ;;  %p124_p3 = scmp.lt.s32.totalorder %s58_s7, %s58_s7 }
  0x29   :  { %v46_v6 = vmul.f32 %v44_v1, %v42_v3  ;;  %p120_p2 = scmp.ne.s32.totalorder %s58_s7, %s119_s1  ;;  %p125_p4 = scmp.lt.s32.totalorder %s119_s1, %s119_s1 }
  0x2a   :  { %v47_v7 = vmul.f32 %v45_v5, %v43_v4 }
  0x2b   :  { %v48_v8 = vadd.f32 %v46_v6, %v40_v0  ;;  %p126_p5 = por %p125_p4, %p124_p3 }
  0x2c   :  { %v49_v9 = vadd.f32 %v47_v7, %v41_v2 }
  0x2d   :  { %50 = vst [vmem:[#allocation7] sm:$0xff] %v48_v8  ;;  %p127_p6 = pnand %p126_p5, %p120_p2 }
  0x2e   :  { %51 = vst [vmem:[#allocation7 + $0x8] sm:$0xff] %v49_v9 }
  0x2f   :  { %130 = shalt.err (!%p127_p6)
}
  0x30   :  { %s131_s10 = scalar_lea.hbm %s214_s2, 256 }
  0x31   :  { %p132_p7 = scmp.ne.s32.totalorder %s214_s2, %s131_s10  ;;  %p135_p8 = scmp.lt.u32.totalorder %s131_s10, %s214_s2 }
  0x33   :  { %p137_p9 = pnand %p135_p8, %p132_p7 }
  0x35   :  { %140 = shalt.err (!%p137_p9)
}
  0x36   :  { %63 = dma.vmem_to_hbm [thread:$0]  %s58_s7, 256, %s214_s2, [#allocation4], %s148_s19, %s148_s19, %s149_s20  }
  0x37   :  { %145 = dma.done.wait [#allocation4], 256  }
  0x38   :  { %146 = vsyncadd [#allocation4], 4294967040 }
  0x39   :  { %67 = vsyncpa [#allocation3], 1 }
  0x3a   :  { %68 = vsyncpa [#allocation6], 1 }
  0x3b   :  { %69 = vsyncpa [#allocation4], 1 }

</bundles_post_ra>
